<compile_context>
chip_gen: v6e
topology: v6e:2x2x1
jax: 0.10.0
libtpu: 0.0.40
codegen_flags: <defaults>
</compile_context>

<pallas_src>
import functools

import jax
import jax.numpy as jnp
import numpy as np
from jax.experimental import pallas as pl
from jax.experimental.pallas import tpu as pltpu

_MIN_PARALLEL_STEPS = 8   # keep both v7x TensorCores (and the pipeline) fed
_LANE = 128               # vreg lane width
_SUBLANE = 8              # vreg sublane width


def _round_up(x, m):
    return (x + m - 1) // m * m


def _cost_volume_kernel(l_ref, r_ref, o_ref, ln_ref, rsh_ref, *, num_disp,
                        compute_dtype):
    """One (batch, row-block) tile.

    l_ref / r_ref  : (C, TH, Wp) NCHW feature tiles (Wp = 128-aligned width).
    o_ref          : (num_disp, TH, Wp) cost slab.
    ln_ref/rsh_ref : (C, TH, Wp) VMEM scratch: L2-normalized left features and
                     the normalized right features rolled right by the current
                     disparity d.

    cost[d, h, w] = sum_c l_n[c, h, w] * r_n[c, h, w - d]   for w >= d, else 0
                  == torch.diagonal(dot_volume, offset=-d) left-padded with d zeros.
    """
    l = l_ref[...].astype(jnp.float32)
    r = r_ref[...].astype(jnp.float32)

    # F.normalize(p=2, dim=1, eps=1e-12): x / max(||x||_2, eps).
    # rsqrt(max(sumsq, eps**2)) == 1 / max(||x||_2, eps) and runs on the EUP slot
    # instead of two full-width VPU divides.
    eps2 = jnp.float32(1e-24)
    ln = l * jax.lax.rsqrt(jnp.maximum(jnp.sum(l * l, axis=0, keepdims=True), eps2))
    rn = r * jax.lax.rsqrt(jnp.maximum(jnp.sum(r * r, axis=0, keepdims=True), eps2))
    # Products run in bf16 when the features arrive as bf16 (2x vreg packing on
    # v6e/v7x); the reduction over C accumulates in f32 either way.
    ln_ref[...] = ln.astype(compute_dtype)
    rsh_ref[...] = rn.astype(compute_dtype)

    _, TH, W = ln_ref.shape
    # Column index for the w < d mask — hoisted out of the disparity loop
    # (broadcasts are not CSE'd by JAX).
    col = jax.lax.broadcasted_iota(jnp.int32, (TH, W), 1)

    # TODO(synk): for large channel counts (C >= ~64-128) a banded-Gram MXU path
    # ((Wt, C) @ (C, Wt+D) blocks via lax.dot_general in bf16, band extracted
    # with a strided pltpu.roll shear) would beat this VPU multiply-reduce;
    # kept on the VPU here since the exercised channel counts are small and the
    # band-extraction layout needs on-hardware validation.
    def body(d, carry):
        cur = rsh_ref[...]                                   # r_n rolled right by d
        prod = ln_ref[...] * cur                             # VPU, compute dtype
        cost = jnp.sum(prod.astype(jnp.float32), axis=0)     # (TH, W) f32 accumulate
        # Mask only the (TH, W) OUTPUT row (columns w < d are out of image)
        # instead of padding/masking the (C, TH, W) input: C-times cheaper.
        o_ref[d] = jnp.where(col >= d, cost, 0.0).astype(o_ref.dtype)

        @pl.when(d + 1 < num_disp)
        def _():
            # Incremental shift on the otherwise-idle XLU slot. Rolling the
            # resident VMEM copy by 1 per disparity keeps the shift static and
            # every access lane-aligned, replacing the previous zero-padded
            # concatenate + misaligned slice (which forced a full (C, TH, W)
            # relayout copy per disparity).
            rsh_ref[...] = pltpu.roll(cur, 1, axis=2)

        return carry

    # fori_loop instead of a full static unroll: realistic num_disp is 64-192 at
    # the finest level, which would blow vreg live ranges and program size.
    jax.lax.fori_loop(0, num_disp, body, 0, unroll=min(8, num_disp))


def _vmem_budget():
    """(physical_vmem_bytes, block_budget_bytes), generation aware."""
    try:
        cap = int(pltpu.get_tpu_info().vmem_capacity_bytes)
    except Exception:
        cap = 64 << 20        # conservative fallback: v7x-sized (64 MiB per TC)
    # Keep ~1/3 headroom for compiler scratch; never budget more than 48 MiB of
    # our own buffers even on 128 MiB parts (v5e/v6e) so the same tiling also
    # fits v7x-class parts.
    return cap, min((cap * 2) // 3, 48 << 20)


def _pick_row_block(N, H, C, num_disp, Wp, budget_bytes, compute_itemsize):
    """Rows per grid step: largest multiple-of-8 block whose *full* VMEM
    footprint (double-buffered blocks + scratch + in-kernel temporaries) fits
    the budget, while keeping enough independent grid steps for megacore /
    dual-TensorCore scheduling."""
    bytes_per_row = Wp * (
        4 * (2 * 2 * C)             # l/r input blocks, double-buffered, f32
        + 4 * (2 * num_disp)        # output block, double-buffered, f32
        + 2 * C * compute_itemsize  # l_n / rolled-r VMEM scratches
        + 4 * (4 * C)               # live f32 temporaries during normalization
    )
    max_rows = max(_SUBLANE, (budget_bytes // bytes_per_row) // _SUBLANE * _SUBLANE)
    th = min(max_rows, _round_up(H, _SUBLANE))
    # Per-step overhead is only ~0.35 us, so trading block size for >= 8 grid
    # steps keeps both v7x TensorCores busy at negligible cost.
    while th > _SUBLANE and N * pl.cdiv(H, th) < _MIN_PARALLEL_STEPS:
        th = max(_SUBLANE, (th // 2) // _SUBLANE * _SUBLANE)
    return th, bytes_per_row


def cost_volume_level(left, right, num_disp):
    """left/right: (N, C, H, W) -> cost volume (N, num_disp, H, W) float32."""
    if left.shape != right.shape:
        raise ValueError(f"left/right shapes differ: {left.shape} vs {right.shape}")
    N, C, H, W = left.shape
    # The torch.diagonal / F.pad / stack reference errors out for num_disp < 1
    # or num_disp > W; fail loudly instead of silently emitting zero planes.
    if num_disp < 1:
        raise ValueError(f"num_disp must be >= 1, got {num_disp}")
    if num_disp > W:
        raise ValueError(f"num_disp={num_disp} exceeds feature width W={W}")

    compute_dtype = jnp.bfloat16 if left.dtype == jnp.bfloat16 else jnp.float32
    Wp = _round_up(W, _LANE)     # lane-dense blocks: unmasked stores, aligned rolls
    cap, budget = _vmem_budget()
    th, bytes_per_row = _pick_row_block(
        N, H, C, num_disp, Wp, budget, np.dtype(compute_dtype).itemsize)
    Hp = pl.cdiv(H, th) * th     # tail rows: pad-and-crop, never a full-H fallback

    lf, rf = left, right
    if (Hp, Wp) != (H, W):
        pad = ((0, 0), (0, 0), (0, Hp - H), (0, Wp - W))
        lf, rf = jnp.pad(left, pad), jnp.pad(right, pad)

    # Explicit, generation-aware scoped-VMEM limit that matches the budget used
    # to pick the tile (defaults are 16/32 MiB and differ per chip).
    vmem_limit = int(min((cap * 9) // 10, max(budget, (bytes_per_row * th * 5) // 4)))

    out = pl.pallas_call(
        functools.partial(_cost_volume_kernel, num_disp=num_disp,
                          compute_dtype=compute_dtype),
        out_shape=jax.ShapeDtypeStruct((N, num_disp, Hp, Wp), jnp.float32),
        grid=(N, Hp // th),
        in_specs=[
            pl.BlockSpec((None, C, th, Wp), lambda n, hb: (n, 0, hb, 0)),
            pl.BlockSpec((None, C, th, Wp), lambda n, hb: (n, 0, hb, 0)),
        ],
        out_specs=pl.BlockSpec((None, num_disp, th, Wp), lambda n, hb: (n, 0, hb, 0)),
        scratch_shapes=[
            pltpu.VMEM((C, th, Wp), compute_dtype),   # normalized left features
            pltpu.VMEM((C, th, Wp), compute_dtype),   # right features rolled by d
        ],
        compiler_params=pltpu.CompilerParams(
            dimension_semantics=("parallel", "parallel"),   # fully independent tiles
            vmem_limit_bytes=vmem_limit),
    )(lf, rf)

    if (Hp, Wp) != (H, W):
        out = out[:, :, :H, :W]
    return out


def body_fst_forward(left_features, right_features, max_disparity):
    """JAX/Pallas equivalent of BodyFst.forward (the module has no parameters)."""
    max_disparity = min(max_disparity, left_features[0].shape[-1])
    cost_volumes = []
    for i, (lf, rf) in enumerate(zip(left_features, right_features)):
        num_disp = max_disparity // (2 ** i)
        cost_volumes.append(cost_volume_level(lf, rf, num_disp))
    return cost_volumes


def _ref_level(left, right, num_disp):
    """Pure-JAX reference mirroring the PyTorch ops (for correctness check)."""
    eps = 1e-12
    l_n = left / jnp.maximum(jnp.sqrt(jnp.sum(left * left, axis=1, keepdims=True)), eps)
    r_n = right / jnp.maximum(jnp.sqrt(jnp.sum(right * right, axis=1, keepdims=True)), eps)
    dot = jnp.einsum('nchw,nchv->nhwv', l_n, r_n)
    rows = []
    for j in range(num_disp):
        diag = jnp.diagonal(dot, offset=-j, axis1=-2, axis2=-1)     # (N, H, W-j)
        rows.append(jnp.pad(diag, ((0, 0), (0, 0), (j, 0))))
    return jnp.stack(rows, axis=1)


if __name__ == "__main__":
    key = jax.random.PRNGKey(0)
    N, C = 2, 8
    level_hw = [(16, 16), (8, 8), (4, 4)]
    max_disparity = 8

    left_features, right_features = [], []
    for (H, W) in level_hw:
        key, k1, k2 = jax.random.split(key, 3)
        left_features.append(jax.random.normal(k1, (N, C, H, W), dtype=jnp.float32))
        right_features.append(jax.random.normal(k2, (N, C, H, W), dtype=jnp.float32))

    cost_volumes = body_fst_forward(left_features, right_features, max_disparity)
    cost_volumes = [jax.block_until_ready(cv) for cv in cost_volumes]

    # Verify against pure-JAX reference of the PyTorch semantics.
    eff_disp = min(max_disparity, left_features[0].shape[-1])
    for i, cv in enumerate(cost_volumes):
        ref = _ref_level(left_features[i], right_features[i], eff_disp // (2 ** i))
        np.testing.assert_allclose(np.asarray(cv), np.asarray(ref), rtol=1e-5, atol=1e-5)

    # Extra robustness check: H not a multiple of 8 and a non-lane-aligned W
    # (exercises the pad-and-crop path with an odd disparity count).
    key, k1, k2 = jax.random.split(key, 3)
    lf_odd = jax.random.normal(k1, (1, 8, 12, 20), dtype=jnp.float32)
    rf_odd = jax.random.normal(k2, (1, 8, 12, 20), dtype=jnp.float32)
    cv_odd = jax.block_until_ready(cost_volume_level(lf_odd, rf_odd, 5))
    ref_odd = _ref_level(lf_odd, rf_odd, 5)
    np.testing.assert_allclose(np.asarray(cv_odd), np.asarray(ref_odd),
                               rtol=1e-5, atol=1e-5)

    print("KERNEL_OK")
</pallas_src>

<mosaic_0001>
module attributes {stable_mosaic.version = 11 : i64} {
  func.func @_cost_volume_kernel(%arg0: i32, %arg1: i32, %arg2: memref<1x8x8x128xf32, #tpu.memory_space<vmem>>, %arg3: memref<1x8x8x128xf32, #tpu.memory_space<vmem>>, %arg4: memref<1x8x8x128xf32, #tpu.memory_space<vmem>>, %arg5: memref<8x8x128xf32, #tpu.memory_space<vmem>>, %arg6: memref<8x8x128xf32, #tpu.memory_space<vmem>>) attributes {dimension_semantics = [#tpu.dimension_semantics<parallel>, #tpu.dimension_semantics<parallel>], iteration_bounds = array<i64: 2, 2>, scalar_prefetch = 0 : i64, scratch_operands = 2 : i64, tpu.core_type = #tpu.core_type<tc>, window_params = [{transform_indices = @transform_0, window_bounds = array<i64: 1, 8, 8, 128>}, {transform_indices = @transform_1, window_bounds = array<i64: 1, 8, 8, 128>}, {transform_indices = @transform_2, window_bounds = array<i64: 1, 8, 8, 128>}]} {
    %c0 = arith.constant 0 : index
    %c0_0 = arith.constant 0 : index
    %c0_1 = arith.constant 0 : index
    %c0_2 = arith.constant 0 : index
    %0 = vector.load %arg2[%c0, %c0_0, %c0_1, %c0_2] : memref<1x8x8x128xf32, #tpu.memory_space<vmem>>, vector<1x8x8x128xf32>
    %1 = vector.shape_cast %0 : vector<1x8x8x128xf32> to vector<8x8x128xf32>
    %c0_3 = arith.constant 0 : index
    %c0_4 = arith.constant 0 : index
    %c0_5 = arith.constant 0 : index
    %c0_6 = arith.constant 0 : index
    %2 = vector.load %arg3[%c0_3, %c0_4, %c0_5, %c0_6] : memref<1x8x8x128xf32, #tpu.memory_space<vmem>>, vector<1x8x8x128xf32>
    %3 = vector.shape_cast %2 : vector<1x8x8x128xf32> to vector<8x8x128xf32>
    %4 = arith.mulf %1, %1 : vector<8x8x128xf32>
    %cst = arith.constant dense<0.000000e+00> : vector<8x128xf32>
    %5 = vector.multi_reduction <add>, %4, %cst [0] : vector<8x8x128xf32> to vector<8x128xf32>
    %6 = vector.shape_cast %5 : vector<8x128xf32> to vector<1x8x128xf32>
    %cst_7 = arith.constant 1.000000e-24 : f32
    %7 = vector.broadcast %cst_7 : f32 to vector<1x8x128xf32>
    %8 = arith.maximumf %6, %7 : vector<1x8x128xf32>
    %9 = math.rsqrt %8 : vector<1x8x128xf32>
    %10 = vector.broadcast %9 : vector<1x8x128xf32> to vector<8x8x128xf32>
    %11 = arith.mulf %1, %10 : vector<8x8x128xf32>
    %12 = arith.mulf %3, %3 : vector<8x8x128xf32>
    %cst_8 = arith.constant dense<0.000000e+00> : vector<8x128xf32>
    %13 = vector.multi_reduction <add>, %12, %cst_8 [0] : vector<8x8x128xf32> to vector<8x128xf32>
    %14 = vector.shape_cast %13 : vector<8x128xf32> to vector<1x8x128xf32>
    %cst_9 = arith.constant 1.000000e-24 : f32
    %15 = vector.broadcast %cst_9 : f32 to vector<1x8x128xf32>
    %16 = arith.maximumf %14, %15 : vector<1x8x128xf32>
    %17 = math.rsqrt %16 : vector<1x8x128xf32>
    %18 = vector.broadcast %17 : vector<1x8x128xf32> to vector<8x8x128xf32>
    %19 = arith.mulf %3, %18 : vector<8x8x128xf32>
    %c0_10 = arith.constant 0 : index
    %c0_11 = arith.constant 0 : index
    %c0_12 = arith.constant 0 : index
    %20 = vector.load %arg5[%c0_10, %c0_11, %c0_12] : memref<8x8x128xf32, #tpu.memory_space<vmem>>, vector<8x8x128xf32>
    tpu.vector_store %arg5[%c0_10, %c0_11, %c0_12], %11 {strides = array<i32>} : memref<8x8x128xf32, #tpu.memory_space<vmem>>, vector<8x8x128xf32>,
    %c0_13 = arith.constant 0 : index
    %c0_14 = arith.constant 0 : index
    %c0_15 = arith.constant 0 : index
    %21 = vector.load %arg6[%c0_13, %c0_14, %c0_15] : memref<8x8x128xf32, #tpu.memory_space<vmem>>, vector<8x8x128xf32>
    tpu.vector_store %arg6[%c0_13, %c0_14, %c0_15], %19 {strides = array<i32>} : memref<8x8x128xf32, #tpu.memory_space<vmem>>, vector<8x8x128xf32>,
    %22 = tpu.iota {dimensions = array<i32: 1>} : vector<8x128xi32>
    %c0_i32 = arith.constant 0 : i32
    %c0_16 = arith.constant 0 : index
    %c0_17 = arith.constant 0 : index
    %c0_18 = arith.constant 0 : index
    %23 = vector.load %arg6[%c0_16, %c0_17, %c0_18] : memref<8x8x128xf32, #tpu.memory_space<vmem>>, vector<8x8x128xf32>
    %c0_19 = arith.constant 0 : index
    %c0_20 = arith.constant 0 : index
    %c0_21 = arith.constant 0 : index
    %24 = vector.load %arg5[%c0_19, %c0_20, %c0_21] : memref<8x8x128xf32, #tpu.memory_space<vmem>>, vector<8x8x128xf32>
    %25 = arith.mulf %24, %23 : vector<8x8x128xf32>
    %cst_22 = arith.constant dense<0.000000e+00> : vector<8x128xf32>
    %26 = vector.multi_reduction <add>, %25, %cst_22 [0] : vector<8x8x128xf32> to vector<8x128xf32>
    %27 = vector.broadcast %c0_i32 : i32 to vector<8x128xi32>
    %28 = arith.cmpi sge, %22, %27 : vector<8x128xi32>
    %cst_23 = arith.constant 0.000000e+00 : f32
    %29 = vector.broadcast %cst_23 : f32 to vector<8x128xf32>
    %30 = arith.select %28, %26, %29 : vector<8x128xi1>, vector<8x128xf32>
    %c0_24 = arith.constant 0 : index
    %31 = arith.index_cast %c0_i32 : i32 to index
    %c0_25 = arith.constant 0 : index
    %c0_26 = arith.constant 0 : index
    %32 = vector.load %arg4[%c0_24, %31, %c0_25, %c0_26] : memref<1x8x8x128xf32, #tpu.memory_space<vmem>>, vector<1x1x8x128xf32>
    %33 = vector.shape_cast %32 : vector<1x1x8x128xf32> to vector<8x128xf32>
    %34 = vector.shape_cast %30 : vector<8x128xf32> to vector<1x1x8x128xf32>
    tpu.vector_store %arg4[%c0_24, %31, %c0_25, %c0_26], %34 {strides = array<i32>} : memref<1x8x8x128xf32, #tpu.memory_space<vmem>>, vector<1x1x8x128xf32>,
    %c1_i32 = arith.constant 1 : i32
    %35 = arith.addi %c0_i32, %c1_i32 : i32
    %c8_i32 = arith.constant 8 : i32
    %36 = arith.cmpi slt, %35, %c8_i32 : i32
    %37 = arith.extui %36 : i1 to i32
    %c0_i32_27 = arith.constant 0 : i32
    %38 = arith.cmpi ne, %37, %c0_i32_27 : i32
    scf.if %38 {
      %c1_i32_128 = arith.constant 1 : i32
      %151 = tpu.dynamic_rotate %23 by %c1_i32_128 dim 2 : vector<8x8x128xf32>, i32 -> vector<8x8x128xf32>
      %c0_129 = arith.constant 0 : index
      %c0_130 = arith.constant 0 : index
      %c0_131 = arith.constant 0 : index
      %152 = vector.load %arg6[%c0_129, %c0_130, %c0_131] : memref<8x8x128xf32, #tpu.memory_space<vmem>>, vector<8x8x128xf32>
      tpu.vector_store %arg6[%c0_129, %c0_130, %c0_131], %151 {strides = array<i32>} : memref<8x8x128xf32, #tpu.memory_space<vmem>>, vector<8x8x128xf32>,
    } else {
    }
    %c1_i32_28 = arith.constant 1 : i32
    %c0_29 = arith.constant 0 : index
    %c0_30 = arith.constant 0 : index
    %c0_31 = arith.constant 0 : index
    %39 = vector.load %arg6[%c0_29, %c0_30, %c0_31] : memref<8x8x128xf32, #tpu.memory_space<vmem>>, vector<8x8x128xf32>
    %c0_32 = arith.constant 0 : index
    %c0_33 = arith.constant 0 : index
    %c0_34 = arith.constant 0 : index
    %40 = vector.load %arg5[%c0_32, %c0_33, %c0_34] : memref<8x8x128xf32, #tpu.memory_space<vmem>>, vector<8x8x128xf32>
    %41 = arith.mulf %40, %39 : vector<8x8x128xf32>
    %cst_35 = arith.constant dense<0.000000e+00> : vector<8x128xf32>
    %42 = vector.multi_reduction <add>, %41, %cst_35 [0] : vector<8x8x128xf32> to vector<8x128xf32>
    %43 = vector.broadcast %c1_i32_28 : i32 to vector<8x128xi32>
    %44 = arith.cmpi sge, %22, %43 : vector<8x128xi32>
    %cst_36 = arith.constant 0.000000e+00 : f32
    %45 = vector.broadcast %cst_36 : f32 to vector<8x128xf32>
    %46 = arith.select %44, %42, %45 : vector<8x128xi1>, vector<8x128xf32>
    %c0_37 = arith.constant 0 : index
    %47 = arith.index_cast %c1_i32_28 : i32 to index
    %c0_38 = arith.constant 0 : index
    %c0_39 = arith.constant 0 : index
    %48 = vector.load %arg4[%c0_37, %47, %c0_38, %c0_39] : memref<1x8x8x128xf32, #tpu.memory_space<vmem>>, vector<1x1x8x128xf32>
    %49 = vector.shape_cast %48 : vector<1x1x8x128xf32> to vector<8x128xf32>
    %50 = vector.shape_cast %46 : vector<8x128xf32> to vector<1x1x8x128xf32>
    tpu.vector_store %arg4[%c0_37, %47, %c0_38, %c0_39], %50 {strides = array<i32>} : memref<1x8x8x128xf32, #tpu.memory_space<vmem>>, vector<1x1x8x128xf32>,
    %c1_i32_40 = arith.constant 1 : i32
    %51 = arith.addi %c1_i32_28, %c1_i32_40 : i32
    %c8_i32_41 = arith.constant 8 : i32
    %52 = arith.cmpi slt, %51, %c8_i32_41 : i32
    %53 = arith.extui %52 : i1 to i32
    %c0_i32_42 = arith.constant 0 : i32
    %54 = arith.cmpi ne, %53, %c0_i32_42 : i32
    scf.if %54 {
      %c1_i32_128 = arith.constant 1 : i32
      %151 = tpu.dynamic_rotate %39 by %c1_i32_128 dim 2 : vector<8x8x128xf32>, i32 -> vector<8x8x128xf32>
      %c0_129 = arith.constant 0 : index
      %c0_130 = arith.constant 0 : index
      %c0_131 = arith.constant 0 : index
      %152 = vector.load %arg6[%c0_129, %c0_130, %c0_131] : memref<8x8x128xf32, #tpu.memory_space<vmem>>, vector<8x8x128xf32>
      tpu.vector_store %arg6[%c0_129, %c0_130, %c0_131], %151 {strides = array<i32>} : memref<8x8x128xf32, #tpu.memory_space<vmem>>, vector<8x8x128xf32>,
    } else {
    }
    %c2_i32 = arith.constant 2 : i32
    %c0_43 = arith.constant 0 : index
    %c0_44 = arith.constant 0 : index
    %c0_45 = arith.constant 0 : index
    %55 = vector.load %arg6[%c0_43, %c0_44, %c0_45] : memref<8x8x128xf32, #tpu.memory_space<vmem>>, vector<8x8x128xf32>
    %c0_46 = arith.constant 0 : index
    %c0_47 = arith.constant 0 : index
    %c0_48 = arith.constant 0 : index
    %56 = vector.load %arg5[%c0_46, %c0_47, %c0_48] : memref<8x8x128xf32, #tpu.memory_space<vmem>>, vector<8x8x128xf32>
    %57 = arith.mulf %56, %55 : vector<8x8x128xf32>
    %cst_49 = arith.constant dense<0.000000e+00> : vector<8x128xf32>
    %58 = vector.multi_reduction <add>, %57, %cst_49 [0] : vector<8x8x128xf32> to vector<8x128xf32>
    %59 = vector.broadcast %c2_i32 : i32 to vector<8x128xi32>
    %60 = arith.cmpi sge, %22, %59 : vector<8x128xi32>
    %cst_50 = arith.constant 0.000000e+00 : f32
    %61 = vector.broadcast %cst_50 : f32 to vector<8x128xf32>
    %62 = arith.select %60, %58, %61 : vector<8x128xi1>, vector<8x128xf32>
    %c0_51 = arith.constant 0 : index
    %63 = arith.index_cast %c2_i32 : i32 to index
    %c0_52 = arith.constant 0 : index
    %c0_53 = arith.constant 0 : index
    %64 = vector.load %arg4[%c0_51, %63, %c0_52, %c0_53] : memref<1x8x8x128xf32, #tpu.memory_space<vmem>>, vector<1x1x8x128xf32>
    %65 = vector.shape_cast %64 : vector<1x1x8x128xf32> to vector<8x128xf32>
    %66 = vector.shape_cast %62 : vector<8x128xf32> to vector<1x1x8x128xf32>
    tpu.vector_store %arg4[%c0_51, %63, %c0_52, %c0_53], %66 {strides = array<i32>} : memref<1x8x8x128xf32, #tpu.memory_space<vmem>>, vector<1x1x8x128xf32>,
    %c1_i32_54 = arith.constant 1 : i32
    %67 = arith.addi %c2_i32, %c1_i32_54 : i32
    %c8_i32_55 = arith.constant 8 : i32
    %68 = arith.cmpi slt, %67, %c8_i32_55 : i32
    %69 = arith.extui %68 : i1 to i32
    %c0_i32_56 = arith.constant 0 : i32
    %70 = arith.cmpi ne, %69, %c0_i32_56 : i32
    scf.if %70 {
      %c1_i32_128 = arith.constant 1 : i32
      %151 = tpu.dynamic_rotate %55 by %c1_i32_128 dim 2 : vector<8x8x128xf32>, i32 -> vector<8x8x128xf32>
      %c0_129 = arith.constant 0 : index
      %c0_130 = arith.constant 0 : index
      %c0_131 = arith.constant 0 : index
      %152 = vector.load %arg6[%c0_129, %c0_130, %c0_131] : memref<8x8x128xf32, #tpu.memory_space<vmem>>, vector<8x8x128xf32>
      tpu.vector_store %arg6[%c0_129, %c0_130, %c0_131], %151 {strides = array<i32>} : memref<8x8x128xf32, #tpu.memory_space<vmem>>, vector<8x8x128xf32>,
    } else {
    }
    %c3_i32 = arith.constant 3 : i32
    %c0_57 = arith.constant 0 : index
    %c0_58 = arith.constant 0 : index
    %c0_59 = arith.constant 0 : index
    %71 = vector.load %arg6[%c0_57, %c0_58, %c0_59] : memref<8x8x128xf32, #tpu.memory_space<vmem>>, vector<8x8x128xf32>
    %c0_60 = arith.constant 0 : index
    %c0_61 = arith.constant 0 : index
    %c0_62 = arith.constant 0 : index
    %72 = vector.load %arg5[%c0_60, %c0_61, %c0_62] : memref<8x8x128xf32, #tpu.memory_space<vmem>>, vector<8x8x128xf32>
    %73 = arith.mulf %72, %71 : vector<8x8x128xf32>
    %cst_63 = arith.constant dense<0.000000e+00> : vector<8x128xf32>
    %74 = vector.multi_reduction <add>, %73, %cst_63 [0] : vector<8x8x128xf32> to vector<8x128xf32>
    %75 = vector.broadcast %c3_i32 : i32 to vector<8x128xi32>
    %76 = arith.cmpi sge, %22, %75 : vector<8x128xi32>
    %cst_64 = arith.constant 0.000000e+00 : f32
    %77 = vector.broadcast %cst_64 : f32 to vector<8x128xf32>
    %78 = arith.select %76, %74, %77 : vector<8x128xi1>, vector<8x128xf32>
    %c0_65 = arith.constant 0 : index
    %79 = arith.index_cast %c3_i32 : i32 to index
    %c0_66 = arith.constant 0 : index
    %c0_67 = arith.constant 0 : index
    %80 = vector.load %arg4[%c0_65, %79, %c0_66, %c0_67] : memref<1x8x8x128xf32, #tpu.memory_space<vmem>>, vector<1x1x8x128xf32>
    %81 = vector.shape_cast %80 : vector<1x1x8x128xf32> to vector<8x128xf32>
    %82 = vector.shape_cast %78 : vector<8x128xf32> to vector<1x1x8x128xf32>
    tpu.vector_store %arg4[%c0_65, %79, %c0_66, %c0_67], %82 {strides = array<i32>} : memref<1x8x8x128xf32, #tpu.memory_space<vmem>>, vector<1x1x8x128xf32>,
    %c1_i32_68 = arith.constant 1 : i32
    %83 = arith.addi %c3_i32, %c1_i32_68 : i32
    %c8_i32_69 = arith.constant 8 : i32
    %84 = arith.cmpi slt, %83, %c8_i32_69 : i32
    %85 = arith.extui %84 : i1 to i32
    %c0_i32_70 = arith.constant 0 : i32
    %86 = arith.cmpi ne, %85, %c0_i32_70 : i32
    scf.if %86 {
      %c1_i32_128 = arith.constant 1 : i32
      %151 = tpu.dynamic_rotate %71 by %c1_i32_128 dim 2 : vector<8x8x128xf32>, i32 -> vector<8x8x128xf32>
      %c0_129 = arith.constant 0 : index
      %c0_130 = arith.constant 0 : index
      %c0_131 = arith.constant 0 : index
      %152 = vector.load %arg6[%c0_129, %c0_130, %c0_131] : memref<8x8x128xf32, #tpu.memory_space<vmem>>, vector<8x8x128xf32>
      tpu.vector_store %arg6[%c0_129, %c0_130, %c0_131], %151 {strides = array<i32>} : memref<8x8x128xf32, #tpu.memory_space<vmem>>, vector<8x8x128xf32>,
    } else {
    }
    %c4_i32 = arith.constant 4 : i32
    %c0_71 = arith.constant 0 : index
    %c0_72 = arith.constant 0 : index
    %c0_73 = arith.constant 0 : index
    %87 = vector.load %arg6[%c0_71, %c0_72, %c0_73] : memref<8x8x128xf32, #tpu.memory_space<vmem>>, vector<8x8x128xf32>
    %c0_74 = arith.constant 0 : index
    %c0_75 = arith.constant 0 : index
    %c0_76 = arith.constant 0 : index
    %88 = vector.load %arg5[%c0_74, %c0_75, %c0_76] : memref<8x8x128xf32, #tpu.memory_space<vmem>>, vector<8x8x128xf32>
    %89 = arith.mulf %88, %87 : vector<8x8x128xf32>
    %cst_77 = arith.constant dense<0.000000e+00> : vector<8x128xf32>
    %90 = vector.multi_reduction <add>, %89, %cst_77 [0] : vector<8x8x128xf32> to vector<8x128xf32>
    %91 = vector.broadcast %c4_i32 : i32 to vector<8x128xi32>
    %92 = arith.cmpi sge, %22, %91 : vector<8x128xi32>
    %cst_78 = arith.constant 0.000000e+00 : f32
    %93 = vector.broadcast %cst_78 : f32 to vector<8x128xf32>
    %94 = arith.select %92, %90, %93 : vector<8x128xi1>, vector<8x128xf32>
    %c0_79 = arith.constant 0 : index
    %95 = arith.index_cast %c4_i32 : i32 to index
    %c0_80 = arith.constant 0 : index
    %c0_81 = arith.constant 0 : index
    %96 = vector.load %arg4[%c0_79, %95, %c0_80, %c0_81] : memref<1x8x8x128xf32, #tpu.memory_space<vmem>>, vector<1x1x8x128xf32>
    %97 = vector.shape_cast %96 : vector<1x1x8x128xf32> to vector<8x128xf32>
    %98 = vector.shape_cast %94 : vector<8x128xf32> to vector<1x1x8x128xf32>
    tpu.vector_store %arg4[%c0_79, %95, %c0_80, %c0_81], %98 {strides = array<i32>} : memref<1x8x8x128xf32, #tpu.memory_space<vmem>>, vector<1x1x8x128xf32>,
    %c1_i32_82 = arith.constant 1 : i32
    %99 = arith.addi %c4_i32, %c1_i32_82 : i32
    %c8_i32_83 = arith.constant 8 : i32
    %100 = arith.cmpi slt, %99, %c8_i32_83 : i32
    %101 = arith.extui %100 : i1 to i32
    %c0_i32_84 = arith.constant 0 : i32
    %102 = arith.cmpi ne, %101, %c0_i32_84 : i32
    scf.if %102 {
      %c1_i32_128 = arith.constant 1 : i32
      %151 = tpu.dynamic_rotate %87 by %c1_i32_128 dim 2 : vector<8x8x128xf32>, i32 -> vector<8x8x128xf32>
      %c0_129 = arith.constant 0 : index
      %c0_130 = arith.constant 0 : index
      %c0_131 = arith.constant 0 : index
      %152 = vector.load %arg6[%c0_129, %c0_130, %c0_131] : memref<8x8x128xf32, #tpu.memory_space<vmem>>, vector<8x8x128xf32>
      tpu.vector_store %arg6[%c0_129, %c0_130, %c0_131], %151 {strides = array<i32>} : memref<8x8x128xf32, #tpu.memory_space<vmem>>, vector<8x8x128xf32>,
    } else {
    }
    %c5_i32 = arith.constant 5 : i32
    %c0_85 = arith.constant 0 : index
    %c0_86 = arith.constant 0 : index
    %c0_87 = arith.constant 0 : index
    %103 = vector.load %arg6[%c0_85, %c0_86, %c0_87] : memref<8x8x128xf32, #tpu.memory_space<vmem>>, vector<8x8x128xf32>
    %c0_88 = arith.constant 0 : index
    %c0_89 = arith.constant 0 : index
    %c0_90 = arith.constant 0 : index
    %104 = vector.load %arg5[%c0_88, %c0_89, %c0_90] : memref<8x8x128xf32, #tpu.memory_space<vmem>>, vector<8x8x128xf32>
    %105 = arith.mulf %104, %103 : vector<8x8x128xf32>
    %cst_91 = arith.constant dense<0.000000e+00> : vector<8x128xf32>
    %106 = vector.multi_reduction <add>, %105, %cst_91 [0] : vector<8x8x128xf32> to vector<8x128xf32>
    %107 = vector.broadcast %c5_i32 : i32 to vector<8x128xi32>
    %108 = arith.cmpi sge, %22, %107 : vector<8x128xi32>
    %cst_92 = arith.constant 0.000000e+00 : f32
    %109 = vector.broadcast %cst_92 : f32 to vector<8x128xf32>
    %110 = arith.select %108, %106, %109 : vector<8x128xi1>, vector<8x128xf32>
    %c0_93 = arith.constant 0 : index
    %111 = arith.index_cast %c5_i32 : i32 to index
    %c0_94 = arith.constant 0 : index
    %c0_95 = arith.constant 0 : index
    %112 = vector.load %arg4[%c0_93, %111, %c0_94, %c0_95] : memref<1x8x8x128xf32, #tpu.memory_space<vmem>>, vector<1x1x8x128xf32>
    %113 = vector.shape_cast %112 : vector<1x1x8x128xf32> to vector<8x128xf32>
    %114 = vector.shape_cast %110 : vector<8x128xf32> to vector<1x1x8x128xf32>
    tpu.vector_store %arg4[%c0_93, %111, %c0_94, %c0_95], %114 {strides = array<i32>} : memref<1x8x8x128xf32, #tpu.memory_space<vmem>>, vector<1x1x8x128xf32>,
    %c1_i32_96 = arith.constant 1 : i32
    %115 = arith.addi %c5_i32, %c1_i32_96 : i32
    %c8_i32_97 = arith.constant 8 : i32
    %116 = arith.cmpi slt, %115, %c8_i32_97 : i32
    %117 = arith.extui %116 : i1 to i32
    %c0_i32_98 = arith.constant 0 : i32
    %118 = arith.cmpi ne, %117, %c0_i32_98 : i32
    scf.if %118 {
      %c1_i32_128 = arith.constant 1 : i32
      %151 = tpu.dynamic_rotate %103 by %c1_i32_128 dim 2 : vector<8x8x128xf32>, i32 -> vector<8x8x128xf32>
      %c0_129 = arith.constant 0 : index
      %c0_130 = arith.constant 0 : index
      %c0_131 = arith.constant 0 : index
      %152 = vector.load %arg6[%c0_129, %c0_130, %c0_131] : memref<8x8x128xf32, #tpu.memory_space<vmem>>, vector<8x8x128xf32>
      tpu.vector_store %arg6[%c0_129, %c0_130, %c0_131], %151 {strides = array<i32>} : memref<8x8x128xf32, #tpu.memory_space<vmem>>, vector<8x8x128xf32>,
    } else {
    }
    %c6_i32 = arith.constant 6 : i32
    %c0_99 = arith.constant 0 : index
    %c0_100 = arith.constant 0 : index
    %c0_101 = arith.constant 0 : index
    %119 = vector.load %arg6[%c0_99, %c0_100, %c0_101] : memref<8x8x128xf32, #tpu.memory_space<vmem>>, vector<8x8x128xf32>
    %c0_102 = arith.constant 0 : index
    %c0_103 = arith.constant 0 : index
    %c0_104 = arith.constant 0 : index
    %120 = vector.load %arg5[%c0_102, %c0_103, %c0_104] : memref<8x8x128xf32, #tpu.memory_space<vmem>>, vector<8x8x128xf32>
    %121 = arith.mulf %120, %119 : vector<8x8x128xf32>
    %cst_105 = arith.constant dense<0.000000e+00> : vector<8x128xf32>
    %122 = vector.multi_reduction <add>, %121, %cst_105 [0] : vector<8x8x128xf32> to vector<8x128xf32>
    %123 = vector.broadcast %c6_i32 : i32 to vector<8x128xi32>
    %124 = arith.cmpi sge, %22, %123 : vector<8x128xi32>
    %cst_106 = arith.constant 0.000000e+00 : f32
    %125 = vector.broadcast %cst_106 : f32 to vector<8x128xf32>
    %126 = arith.select %124, %122, %125 : vector<8x128xi1>, vector<8x128xf32>
    %c0_107 = arith.constant 0 : index
    %127 = arith.index_cast %c6_i32 : i32 to index
    %c0_108 = arith.constant 0 : index
    %c0_109 = arith.constant 0 : index
    %128 = vector.load %arg4[%c0_107, %127, %c0_108, %c0_109] : memref<1x8x8x128xf32, #tpu.memory_space<vmem>>, vector<1x1x8x128xf32>
    %129 = vector.shape_cast %128 : vector<1x1x8x128xf32> to vector<8x128xf32>
    %130 = vector.shape_cast %126 : vector<8x128xf32> to vector<1x1x8x128xf32>
    tpu.vector_store %arg4[%c0_107, %127, %c0_108, %c0_109], %130 {strides = array<i32>} : memref<1x8x8x128xf32, #tpu.memory_space<vmem>>, vector<1x1x8x128xf32>,
    %c1_i32_110 = arith.constant 1 : i32
    %131 = arith.addi %c6_i32, %c1_i32_110 : i32
    %c8_i32_111 = arith.constant 8 : i32
    %132 = arith.cmpi slt, %131, %c8_i32_111 : i32
    %133 = arith.extui %132 : i1 to i32
    %c0_i32_112 = arith.constant 0 : i32
    %134 = arith.cmpi ne, %133, %c0_i32_112 : i32
    scf.if %134 {
      %c1_i32_128 = arith.constant 1 : i32
      %151 = tpu.dynamic_rotate %119 by %c1_i32_128 dim 2 : vector<8x8x128xf32>, i32 -> vector<8x8x128xf32>
      %c0_129 = arith.constant 0 : index
      %c0_130 = arith.constant 0 : index
      %c0_131 = arith.constant 0 : index
      %152 = vector.load %arg6[%c0_129, %c0_130, %c0_131] : memref<8x8x128xf32, #tpu.memory_space<vmem>>, vector<8x8x128xf32>
      tpu.vector_store %arg6[%c0_129, %c0_130, %c0_131], %151 {strides = array<i32>} : memref<8x8x128xf32, #tpu.memory_space<vmem>>, vector<8x8x128xf32>,
    } else {
    }
    %c7_i32 = arith.constant 7 : i32
    %c0_113 = arith.constant 0 : index
    %c0_114 = arith.constant 0 : index
    %c0_115 = arith.constant 0 : index
    %135 = vector.load %arg6[%c0_113, %c0_114, %c0_115] : memref<8x8x128xf32, #tpu.memory_space<vmem>>, vector<8x8x128xf32>
    %c0_116 = arith.constant 0 : index
    %c0_117 = arith.constant 0 : index
    %c0_118 = arith.constant 0 : index
    %136 = vector.load %arg5[%c0_116, %c0_117, %c0_118] : memref<8x8x128xf32, #tpu.memory_space<vmem>>, vector<8x8x128xf32>
    %137 = arith.mulf %136, %135 : vector<8x8x128xf32>
    %cst_119 = arith.constant dense<0.000000e+00> : vector<8x128xf32>
    %138 = vector.multi_reduction <add>, %137, %cst_119 [0] : vector<8x8x128xf32> to vector<8x128xf32>
    %139 = vector.broadcast %c7_i32 : i32 to vector<8x128xi32>
    %140 = arith.cmpi sge, %22, %139 : vector<8x128xi32>
    %cst_120 = arith.constant 0.000000e+00 : f32
    %141 = vector.broadcast %cst_120 : f32 to vector<8x128xf32>
    %142 = arith.select %140, %138, %141 : vector<8x128xi1>, vector<8x128xf32>
    %c0_121 = arith.constant 0 : index
    %143 = arith.index_cast %c7_i32 : i32 to index
    %c0_122 = arith.constant 0 : index
    %c0_123 = arith.constant 0 : index
    %144 = vector.load %arg4[%c0_121, %143, %c0_122, %c0_123] : memref<1x8x8x128xf32, #tpu.memory_space<vmem>>, vector<1x1x8x128xf32>
    %145 = vector.shape_cast %144 : vector<1x1x8x128xf32> to vector<8x128xf32>
    %146 = vector.shape_cast %142 : vector<8x128xf32> to vector<1x1x8x128xf32>
    tpu.vector_store %arg4[%c0_121, %143, %c0_122, %c0_123], %146 {strides = array<i32>} : memref<1x8x8x128xf32, #tpu.memory_space<vmem>>, vector<1x1x8x128xf32>,
    %c1_i32_124 = arith.constant 1 : i32
    %147 = arith.addi %c7_i32, %c1_i32_124 : i32
    %c8_i32_125 = arith.constant 8 : i32
    %148 = arith.cmpi slt, %147, %c8_i32_125 : i32
    %149 = arith.extui %148 : i1 to i32
    %c0_i32_126 = arith.constant 0 : i32
    %150 = arith.cmpi ne, %149, %c0_i32_126 : i32
    scf.if %150 {
      %c1_i32_128 = arith.constant 1 : i32
      %151 = tpu.dynamic_rotate %135 by %c1_i32_128 dim 2 : vector<8x8x128xf32>, i32 -> vector<8x8x128xf32>
      %c0_129 = arith.constant 0 : index
      %c0_130 = arith.constant 0 : index
      %c0_131 = arith.constant 0 : index
      %152 = vector.load %arg6[%c0_129, %c0_130, %c0_131] : memref<8x8x128xf32, #tpu.memory_space<vmem>>, vector<8x8x128xf32>
      tpu.vector_store %arg6[%c0_129, %c0_130, %c0_131], %151 {strides = array<i32>} : memref<8x8x128xf32, #tpu.memory_space<vmem>>, vector<8x8x128xf32>,
    } else {
    }
    %c8_i32_127 = arith.constant 8 : i32
    return
  }
  func.func @transform_0(%arg0: i32, %arg1: i32) -> (i32, i32, i32, i32) {
    %c0_i32 = arith.constant 0 : i32
    %c0_i32_0 = arith.constant 0 : i32
    %c0_i32_1 = arith.constant 0 : i32
    return %arg0, %c0_i32, %arg1, %c0_i32_0 : i32, i32, i32, i32
  }
  func.func @transform_1(%arg0: i32, %arg1: i32) -> (i32, i32, i32, i32) {
    %c0_i32 = arith.constant 0 : i32
    %c0_i32_0 = arith.constant 0 : i32
    %c0_i32_1 = arith.constant 0 : i32
    return %arg0, %c0_i32, %arg1, %c0_i32_0 : i32, i32, i32, i32
  }
  func.func @transform_2(%arg0: i32, %arg1: i32) -> (i32, i32, i32, i32) {
    %c0_i32 = arith.constant 0 : i32
    %c0_i32_0 = arith.constant 0 : i32
    %c0_i32_1 = arith.constant 0 : i32
    return %arg0, %c0_i32, %arg1, %c0_i32_0 : i32, i32, i32, i32
  }
}

</mosaic_0001>

<bundles_post_ra>
// kernel: tpu_custom_call.1
= control target key start
LH: loop header
LB: loop body
LE: loop exit
PB: predicated region body
PF: predicated region fallthrough
CT: control target
= control target key end

     0   :  { %s1567_s0 = inlined_call_operand.hbm [shape: f32[2,8,16,128], index: 0, kind: input, shape index: {}]   ;;  %s1568_s1 = inlined_call_operand.hbm [shape: f32[2,8,16,128], index: 1, kind: input, shape index: {}]   ;;  %s1569_s2 = inlined_call_operand.hbm [shape: f32[2,8,16,128], index: 2, kind: output, shape index: {}]  }
   0x1   :  { %1573 = sst [smem:[#allocation16_spill]] %s1567_s0 }
   0x2   :  { %7 = vsyncpa [#allocation5], 0 }
   0x3   :  { %9 = vsyncpa [#allocation5 + $0x1], 0 }
   0x4   :  { %10 = vsyncpa [#allocation8], 0 }
   0x5   :  { %12 = vsyncpa [#allocation8 + $0x1], 0 }
   0x6   :  { %13 = vsyncpa [#allocation6], 0 }
   0x7   :  { %15 = vsyncpa [#allocation6 + $0x1], 0  ;;  %s1184_s9 = smov 0   ;;  %s1186_s10 = smov 0  }
   0x8   :  { %s1188_s11 = smov 0   ;;  %s1190_s12 = smov 0  }
   0x9   :  { %s1192_s13 = smov 0   ;;  %s1194_s14 = smov 0  }
   0xa   :  { %s1196_s15 = smov 0   ;;  %s1198_s16 = smov 0  }
   0xb LB: > { %1574 = sst [smem:[#allocation13_spill]] %s1153_s15  ;;  %s881_s17 = sadd.s32 4294967295, %s1157_s16   ;;  %s1157_s16 = sphi %s1198_s16, %s21_s16   ;;  %s1153_s15 = sphi %s1196_s15, %s1586_s15   ;;  %s1149_s14 = sphi %s1194_s14, %s1591_s14   ;;  %s1145_s13 = sphi %s1192_s13, %s1584_s13   ;;  %s1141_s12 = sphi %s1190_s12, %s1590_s12   ;;  %s1137_s11 = sphi %s1188_s11, %s1589_s11   ;;  %s1133_s10 = sphi %s1186_s10, %s1588_s10   ;;  %s1129_s9 = sphi %s1184_s9, %s1587_s9  }
   0xc   : > { %s882_s18 = sadd.s32 4294967294, %s1157_s16   ;;  %s30_s19 = sadd.s32 1, %s1149_s14 }
   0xd   : > { %s33_s20 = sadd.s32 1, %s1153_s15  ;;  %p31_p0 = scmp.ge.s32.totalorder %s30_s19, 2 }
   0xe   : > { %s42_s21 = sadd.s32 1, %s1137_s11  ;;  %p49_p1 = scmp.ne.s32.totalorder %s1137_s11, %s1133_s10 }
   0xf   : > { %p50_p2 = scmp.eq.s32.totalorder %s1157_s16, 0  ;;  %s1593_s19 = smov (%p31_p0, %s30_s19), 0 }
  0x10   : > { %1575 = sst [smem:[#allocation14_spill]] %s1593_s19  ;;  %s1595_s20 = smov (!%p31_p0, %s33_s20), %s1153_s15 }
  0x11   : > { %s38_s22 = ssub.s32 %s1149_s14, %s1593_s19  ;;  %p1237_p3 = por %p50_p2, %p49_p1 }
  0x12   : > { %p35_p4 = scmp.ge.s32.totalorder %s1595_s20, 2  ;;  %p55_p5 = scmp.ne.s32.totalorder %s1133_s10, %s1129_s9 }
  0x13   : > { %p56_p6 = scmp.eq.s32.totalorder %s881_s17, 0  ;;  %p109_p7 = scmp.eq.s32.totalorder %s881_s17, 3 }
  0x14   : > { %s1597_s20 = smov (%p35_p4, %s1595_s20), 0  ;;  %p115_p10 = scmp.eq.s32.totalorder %s882_s18, 3 }
  0x15   : > { %1577 = sst [smem:[#allocation15_spill]] %s1597_s20  ;;  %p1245_p8 = por %p56_p6, %p55_p5 }
  0x16   : > { %p1249_p9 = por %p109_p7, %p49_p1  ;;  %s37_s26 = ssub.s32 %s1153_s15, %s1597_s20 }
  0x17   : > { %s39_s27 = sor.u32 %s38_s22, %s37_s26  ;;  %p1255_p12 = por %p115_p10, %p55_p5 }
  0x18   : > { %p40_p11 = scmp.eq.s32.totalorder %s39_s27, 0  ;;  %p924_p13 = scmp.lt.s32.totalorder %s1157_s16, 4 }
  0x19   : > { %s1261_s29 = sand.u32 1, %s1137_s11   ;;  %s886_s4 = sshll.u32 %s1153_s15, 4 }
  0x1a   : > { %s1264_s30 = scalar_select %p40_p11, %s1137_s11, %s42_s21  }
  0x1b   : > { %s885_s3 = sshll.u32 %s1261_s29, 6  ;;  %s1269_s5 = sadd.s32 %s1149_s14, %s886_s4 }
  0x1c   : > { %s139_s6 = scalar_lea.vmem [#allocation4], %s885_s3  ;;  %s887_s8 = sshll.u32 %s1269_s5, 7 }
  0x1d   : > { %s147_s7 = sshll.u32 %s139_s6, 4  ;;  %s1581_s0 = sld [smem:[#allocation16_spill]]  ;;  %s148_s7 = int_to_ptr.vmem [resolvable:$true] %s147_s7 }
  0x1e   : > { %p1279_p0 = pnand %p924_p13, %p1237_p3  ;;  %s136_s21 = scalar_lea.sflag [#allocation5], %s1261_s29 }
  0x1f   : > { %s1014_s27 = scalar_lea.vmem %s148_s7, 1024  ;;  %s1159_s4 = smov [#allocation4]  }
  0x20   : > { %p1003_p1 = pneg %p1279_p0  ;;  %p1015_p2 = scmp.ne.s32.totalorder %s148_s7, %s1014_s27 }
  0x21   : > { %s1019_s5 = sshll.u32 %s1159_s4, 4  ;;  %s1020_s5 = int_to_ptr.vmem [resolvable:$false] %s1019_s5 }
  0x22   : > { %p1017_p4 = pnand %p1015_p2, %p1003_p1  ;;  %s1021_s6 = scalar_lea.vmem %s1020_s5, 2048 }
  0x23   : > { %s146_s22 = scalar_lea.hbm %s1581_s0, %s887_s8  ;;  %p1022_p6 = scmp.lt.s32.totalorder %s148_s7, %s1020_s5 }
  0x24   : > { %p1018_p5 = pneg %p1017_p4  ;;  %p1023_p3 = scmp.lt.s32.totalorder %s1021_s6, %s1014_s27 }
  0x26   : > { %p1024_p7 = por %p1023_p3, %p1022_p6 }
  0x28   : > { %p1025_p10 = pnand %p1024_p7, %p1018_p5 }
  0x2a   : > { %1028 = shalt.err (!%p1025_p10)
}
  0x2b   : > { %s1160_s23 = smov 256   ;;  %s1161_s17 = smov 128  }
  0x2c   : > { %s1162_s18 = smov 8   ;;  %p891_p11 = scmp.ge.s32.totalorder %s1157_s16, 1 }
  0x2d   : > { %916 = dma.hbm_to_vmem [thread:$0]  (!%p1279_p0), %s146_s22, 1024, %s148_s7, %s136_s21, %s1160_s23, %s1161_s17, %s1162_s18  }
  0x2e   : > { %p177_p13 = scmp.lt.s32.totalorder %s1157_s16, 5  ;;  %s168_s6 = scalar_lea.hbm %s1568_s1, %s887_s8 }
  0x2f   : > { %s161_s0 = scalar_lea.vmem [#allocation7], %s885_s3  ;;  %s158_s19 = scalar_lea.sflag [#allocation8], %s1261_s29 }
  0x30   : > { %p1294_p2 = pnand %p891_p11, %p177_p13  ;;  %s169_s20 = sshll.u32 %s161_s0, 4  ;;  %s170_s20 = int_to_ptr.vmem [resolvable:$true] %s169_s20 }
  0x31   : > { %s1042_s15 = scalar_lea.vmem %s170_s20, 1024  ;;  %s1163_s7 = smov [#allocation7]  }
  0x32   : > { %p1043_p4 = scmp.ne.s32.totalorder %s170_s20, %s1042_s15  ;;  %s1047_s22 = sshll.u32 %s1163_s7, 4  ;;  %s1048_s22 = int_to_ptr.vmem [resolvable:$false] %s1047_s22 }
  0x33   : > { %s1049_s21 = scalar_lea.vmem %s1048_s22, 2048  ;;  %p1050_p3 = scmp.lt.s32.totalorder %s170_s20, %s1048_s22 }
  0x34   : > { %p1045_p5 = pnand %p1043_p4, %p1003_p1  ;;  %p1051_p7 = scmp.lt.s32.totalorder %s1049_s21, %s1042_s15 }
  0x36   : > { %p1046_p6 = pneg %p1045_p5  ;;  %p1052_p10 = por %p1051_p7, %p1050_p3 }
  0x38   : > { %p1053_p11 = pnand %p1052_p10, %p1046_p6 }
  0x3a   : > { %1056 = shalt.err (!%p1053_p11)
}
  0x3b   : > { %919 = dma.hbm_to_vmem [thread:$0]  (!%p1279_p0), %s168_s6, 1024, %s170_s20, %s158_s19, %s1160_s23, %s1161_s17, %s1162_s18  }
  0x3c   : > { %181 = sbr.rel (%p1294_p2) target bundleno = 944 (0x3b0), region = 28  ;;  %s1313_s0 = sand.u32 (!%p1294_p2), 1, %s1133_s10  }
  0x3d   : > { %s1316_s29 = sshll.u32 (!%p1294_p2), %s1313_s0, 6  ;;  %s184_s15 = scalar_lea.sflag (!%p1294_p2), [#allocation5], %s1313_s0 }
  0x3e   : > { %s1320_s3 = scalar_lea.vmem (!%p1294_p2), [#allocation4], %s1316_s29 }
  0x41   : > { %1116 = dma.done.wait (%p1245_p8), %s184_s15, 1024  }
  0x42   : > { %1118 = vsyncadd (%p1245_p8), %s184_s15, 4294966272  ;;  %s193_s19 = scalar_lea.sflag [#allocation8], %s1313_s0  ;;  %s1328_s20 = scalar_lea.vmem [#allocation7], %s1316_s29 }
  0x43   : > { %1120 = dma.done.wait (%p1245_p8), %s193_s19, 1024  }
  0x44   : > { %1122 = vsyncadd (%p1245_p8), %s193_s19, 4294966272  ;;  %v230_v0 = vld [vmem:[%s1328_s20] sm:$0xff]  ;;  %v231_v1 = vld [vmem:[%s1328_s20 + $0x8] sm:$0xff]  ;;  %s1164_s24 = smov 1   ;;  %s1383_s8 = scalar_lea.vmem [#allocation9], %s1316_s29 }
  0x45   : > { %v232_v2 = vld [vmem:[%s1328_s20 + $0x10] sm:$0xff]  ;;  %v233_v3 = vld [vmem:[%s1328_s20 + $0x18] sm:$0xff]  ;;  %v263_v4 = vmul.f32 %v230_v0, %v230_v0  ;;  %v264_v5 = vmul.f32 %v231_v1, %v231_v1  ;;  %v234_v7 = vld [vmem:[%s1328_s20 + $0x20] sm:$0xff]  ;;  %s903_s26 = sshll.u32 %s1145_s13, 4  ;;  %s768_s17 = sshll.u32 %s1383_s8, 4  ;;  %s1507_s17 = int_to_ptr.vmem [resolvable:$true] %s768_s17 }
  0x46   : > { %v265_v6 = vmul.f32 %v232_v2, %v232_v2  ;;  %v222_v8 = vld [vmem:[%s1320_s3] sm:$0xff]  ;;  %v266_v9 = vmul.f32 %v233_v3, %v233_v3  ;;  %v223_v11 = vld [vmem:[%s1320_s3 + $0x8] sm:$0xff]  ;;  %v224_v12 = vld [vmem:[%s1320_s3 + $0x10] sm:$0xff]  ;;  %v267_v18 = vmul.f32 %v234_v7, %v234_v7  ;;  %s765_s23 = sadd.s32 %s1141_s12, %s903_s26  ;;  %s754_s27 = scalar_lea.sflag [#allocation6], %s1313_s0 }
  0x47   : > { %v271_v10 = vadd.f32 %v264_v5, %v263_v4  ;;  %v225_v13 = vld [vmem:[%s1320_s3 + $0x18] sm:$0xff]  ;;  %v238_v14 = vmul.f32 %v222_v8, %v222_v8  ;;  %v235_v15 = vld [vmem:[%s1328_s20 + $0x28] sm:$0xff]  ;;  %v239_v16 = vmul.f32 %v223_v11, %v223_v11  ;;  %v240_v17 = vmul.f32 %v224_v12, %v224_v12  ;;  %v226_v20 = vld [vmem:[%s1320_s3 + $0x20] sm:$0xff]  ;;  %s904_s18 = sshll.u32 %s765_s23, 7  ;;  %s1057_s5 = scalar_lea.vmem %s1507_s17, 1024 }
  0x48   : > { %v236_v21 = vld [vmem:[%s1328_s20 + $0x30] sm:$0xff]  ;;  %v241_v22 = vmul.f32 %v225_v13, %v225_v13  ;;  %v268_v24 = vmul.f32 %v235_v15, %v235_v15  ;;  %v227_v26 = vld [vmem:[%s1320_s3 + $0x28] sm:$0xff]  ;;  %v237_v27 = vld [vmem:[%s1328_s20 + $0x38] sm:$0xff]  ;;  %v242_v28 = vmul.f32 %v226_v20, %v226_v20  ;;  %s1513_s12 = scalar_lea.hbm %s1569_s2, %s904_s18  ;;  %p1058_p8 = scmp.ne.s32.totalorder %s1507_s17, %s1057_s5 }
  0x49   : > { %v272_v19 = vadd.f32 %v271_v10, %v265_v6  ;;  %v246_v23 = vadd.f32 %v239_v16, %v238_v14  ;;  %v269_v30 = vmul.f32 %v236_v21, %v236_v21  ;;  %v228_v32 = vld [vmem:[%s1320_s3 + $0x30] sm:$0xff]  ;;  %v243_v33 = vmul.f32 %v227_v26, %v227_v26  ;;  %v229_v37 = vld [vmem:[%s1320_s3 + $0x38] sm:$0xff]  ;;  %s1165_s6 = smov [#allocation9]  }
  0x4a   : > { %v270_v35 = vmul.f32 %v237_v27, %v237_v27  ;;  %v244_v38 = vmul.f32 %v228_v32, %v228_v32  ;;  %v245_v41 = vmul.f32 %v229_v37, %v229_v37  ;;  %p1059_p0 = pnand %p1058_p8, %p1249_p9  ;;  %s1061_s7 = sshll.u32 %s1165_s6, 4  ;;  %s1062_s7 = int_to_ptr.vmem [resolvable:$false] %s1061_s7 }
  0x4b   : > { %v273_v25 = vadd.f32 %v272_v19, %v266_v9  ;;  %v247_v29 = vadd.f32 %v246_v23, %v240_v17  ;;  %s1063_s22 = scalar_lea.vmem %s1062_s7, 2048  ;;  %p1064_p13 = scmp.lt.s32.totalorder %s1507_s17, %s1062_s7 }
  0x4c   : > { %p1060_p1 = pneg %p1059_p0  ;;  %p1065_p2 = scmp.lt.s32.totalorder %s1063_s22, %s1057_s5 }
  0x4d   : > { %v274_v31 = vadd.f32 %v273_v25, %v267_v18  ;;  %v248_v34 = vadd.f32 %v247_v29, %v241_v22 }
  0x4e   : > { %p1066_p4 = por %p1065_p2, %p1064_p13 }
  0x4f   : > { %v275_v36 = vadd.f32 %v274_v31, %v268_v24  ;;  %v249_v39 = vadd.f32 %v248_v34, %v242_v28 }
  0x50   : > { %p1067_p5 = pnand %p1066_p4, %p1060_p1 }
  0x51   : > { %v276_v40 = vadd.f32 %v275_v36, %v269_v30  ;;  %v250_v42 = vadd.f32 %v249_v39, %v243_v33  ;;  %v304_v30 = vlaneseq }
  0x53   : > { %v277_v43 = vadd.f32 %v276_v40, %v270_v35  ;;  %v251_v44 = vadd.f32 %v250_v42, %v244_v38 }
  0x55   : > { %v278_v45 = vmax.f32 %v277_v43, 1e-24  ;;  %v252_v46 = vadd.f32 %v251_v44, %v245_v41 }
  0x57   : > { %997 = vrsqrt.f32 %v278_v45  ;;  %v253_v47 = vmax.f32 %v252_v46, 1e-24 }
  0x59   : > { %999 = vrsqrt.f32 %v253_v47 }
  0x64   : > { %v998_v48 = vpop.eup %997 }
  0x65   : > { %v280_v49 = vmul.f32 %v998_v48, %v230_v0  ;;  %v282_v50 = vmul.f32 %v998_v48, %v232_v2  ;;  %v281_v52 = vmul.f32 %v998_v48, %v231_v1  ;;  %v283_v53 = vmul.f32 %v998_v48, %v233_v3 }
  0x66   : > { %v1000_v51 = vpop.eup %999  ;;  %v284_v61 = vmul.f32 %v998_v48, %v234_v7  ;;  %v285_v62 = vmul.f32 %v998_v48, %v235_v15  ;;  %v286_v5 = vmul.f32 %v998_v48, %v236_v21  ;;  %v287_v6 = vmul.f32 %v998_v48, %v237_v27 }
  0x67   : > { %340 = vrot.lane.b32.xlu0 %v280_v49, %s1164_s24  ;;  %344 = vrot.lane.b32.xlu1 %v282_v50, %s1164_s24  ;;  %v1352_v54 = vmul.f32 %v1000_v51, %v222_v8  ;;  %v1354_v55 = vmul.f32 %v1000_v51, %v224_v12  ;;  %v1356_v56 = vmul.f32 %v1000_v51, %v223_v11 }
  0x68   : > { %v1361_v60 = vmul.f32 %v1000_v51, %v225_v13  ;;  %v1366_v1 = vmul.f32 %v1000_v51, %v226_v20  ;;  %v1369_v4 = vmul.f32 %v1000_v51, %v227_v26  ;;  %v1374_v9 = vmul.f32 %v1000_v51, %v228_v32 }
  0x69   : > { %v322_v57 = vmul.f32 %v280_v49, %v1352_v54  ;;  %v324_v58 = vmul.f32 %v282_v50, %v1354_v55  ;;  %v323_v59 = vmul.f32 %v281_v52, %v1356_v56  ;;  %v1377_v12 = vmul.f32 %v1000_v51, %v229_v37 }
  0x6a   : > { %v325_v0 = vmul.f32 %v283_v53, %v1361_v60  ;;  %v326_v3 = vmul.f32 %v284_v61, %v1366_v1  ;;  %v327_v7 = vmul.f32 %v285_v62, %v1369_v4  ;;  %v328_v11 = vmul.f32 %v286_v5, %v1374_v9 }
  0x6b   : > { %342 = vrot.lane.b32.xlu0 %v281_v52, %s1164_s24  ;;  %346 = vrot.lane.b32.xlu1 %v283_v53, %s1164_s24  ;;  %v330_v63 = vadd.f32 %v323_v59, %v322_v57  ;;  %v329_v14 = vmul.f32 %v287_v6, %v1377_v12  ;;  %v1400_v37 = vand.u32 127, %v304_v30 }
  0x6d   : > { %v331_v2 = vadd.f32 %v330_v63, %v324_v58  ;;  %vm395_vm0 = vcmp.ge.s32.totalorder %v1400_v37, 1  ;;  %vm454_vm1 = vcmp.ge.s32.totalorder %v1400_v37, 2  ;;  %vm513_vm2 = vcmp.ge.s32.totalorder %v1400_v37, 3 }
  0x6e   : > { %vm572_vm3 = vcmp.ge.s32.totalorder %v1400_v37, 4  ;;  %vm631_vm4 = vcmp.ge.s32.totalorder %v1400_v37, 5  ;;  %vm690_vm5 = vcmp.ge.s32.totalorder %v1400_v37, 6  ;;  %vm749_vm6 = vcmp.ge.s32.totalorder %v1400_v37, 7 }
  0x6f   : > { %348 = vrot.lane.b32.xlu0 %v284_v61, %s1164_s24  ;;  %350 = vrot.lane.b32.xlu1 %v285_v62, %s1164_s24  ;;  %v332_v8 = vadd.f32 %v331_v2, %v325_v0 }
  0x71   : > { %v333_v10 = vadd.f32 %v332_v8, %v326_v3 }
  0x73   : > { %352 = vrot.lane.b32.xlu0 %v286_v5, %s1164_s24  ;;  %354 = vrot.lane.b32.xlu1 %v287_v6, %s1164_s24  ;;  %v334_v13 = vadd.f32 %v333_v10, %v327_v7 }
  0x75   : > { %v335_v15 = vadd.f32 %v334_v13, %v328_v11 }
  0x77   : > { %v336_v16 = vadd.f32 %v335_v15, %v329_v14 }
  0x79   : > { %339 = vst [vmem:[%s1383_s8] sm:$0xff] %v336_v16 }
  0xd9   : > { %v341_v17 = vpop.permute.xlu0 %340  ;;  %v345_v18 = vpop.permute.xlu1 %344 }
  0xda   : > { %399 = vrot.lane.b32.xlu0 %v341_v17, %s1164_s24  ;;  %v380_v21 = vmul.f32 %v341_v17, %v1352_v54  ;;  %v382_v23 = vmul.f32 %v345_v18, %v1354_v55 }
  0xdd   : > { %v343_v19 = vpop.permute.xlu0 %342  ;;  %v347_v20 = vpop.permute.xlu1 %346 }
  0xde   : > { %v381_v22 = vmul.f32 %v343_v19, %v1356_v56  ;;  %403 = vrot.lane.b32.xlu0 %v345_v18, %s1164_s24  ;;  %401 = vrot.lane.b32.xlu1 %v343_v19, %s1164_s24  ;;  %v383_v25 = vmul.f32 %v347_v20, %v1361_v60 }
  0xe0   : > { %v388_v24 = vadd.f32 %v381_v22, %v380_v21 }
  0xe1   : > { %v349_v26 = vpop.permute.xlu0 %348  ;;  %v351_v27 = vpop.permute.xlu1 %350 }
  0xe2   : > { %v389_v28 = vadd.f32 %v388_v24, %v382_v23  ;;  %405 = vrot.lane.b32.xlu1 %v347_v20, %s1164_s24  ;;  %v384_v29 = vmul.f32 %v349_v26, %v1366_v1  ;;  %407 = vrot.lane.b32.xlu0 %v349_v26, %s1164_s24  ;;  %v385_v32 = vmul.f32 %v351_v27, %v1369_v4 }
  0xe4   : > { %v390_v31 = vadd.f32 %v389_v28, %v383_v25 }
  0xe5   : > { %v353_v33 = vpop.permute.xlu0 %352  ;;  %v355_v34 = vpop.permute.xlu1 %354 }
  0xe6   : > { %v391_v35 = vadd.f32 %v390_v31, %v384_v29  ;;  %409 = vrot.lane.b32.xlu1 %v351_v27, %s1164_s24  ;;  %v386_v36 = vmul.f32 %v353_v33, %v1374_v9  ;;  %411 = vrot.lane.b32.xlu0 %v353_v33, %s1164_s24  ;;  %v387_v39 = vmul.f32 %v355_v34, %v1377_v12 }
  0xe8   : > { %v392_v38 = vadd.f32 %v391_v35, %v385_v32 }
  0xea   : > { %v393_v40 = vadd.f32 %v392_v38, %v386_v36  ;;  %413 = vrot.lane.b32.xlu1 %v355_v34, %s1164_s24 }
  0xec   : > { %v394_v41 = vadd.f32 %v393_v40, %v387_v39 }
  0xee   : > { %v396_v42 = vsel %vm395_vm0, %v394_v41, 0.0 }
  0xef   : > { %895 = vst [vmem:[%s1383_s8 + $0x8] sm:$0xff] %v396_v42 }
 0x14c   : > { %v400_v43 = vpop.permute.xlu0 %399 }
 0x14d   : > { %458 = vrot.lane.b32.xlu0 %v400_v43, %s1164_s24  ;;  %v439_v46 = vmul.f32 %v400_v43, %v1352_v54 }
 0x150   : > { %v402_v44 = vpop.permute.xlu1 %401  ;;  %v404_v45 = vpop.permute.xlu0 %403 }
 0x151   : > { %v440_v47 = vmul.f32 %v402_v44, %v1356_v56  ;;  %460 = vrot.lane.b32.xlu1 %v402_v44, %s1164_s24  ;;  %462 = vrot.lane.b32.xlu0 %v404_v45, %s1164_s24  ;;  %v441_v49 = vmul.f32 %v404_v45, %v1354_v55 }
 0x153   : > { %v447_v48 = vadd.f32 %v440_v47, %v439_v46 }
 0x154   : > { %v406_v50 = vpop.permute.xlu1 %405  ;;  %v408_v51 = vpop.permute.xlu0 %407 }
 0x155   : > { %v448_v52 = vadd.f32 %v447_v48, %v441_v49  ;;  %v442_v53 = vmul.f32 %v406_v50, %v1361_v60  ;;  %464 = vrot.lane.b32.xlu1 %v406_v50, %s1164_s24  ;;  %v443_v57 = vmul.f32 %v408_v51, %v1366_v1  ;;  %466 = vrot.lane.b32.xlu0 %v408_v51, %s1164_s24 }
 0x157   : > { %v449_v58 = vadd.f32 %v448_v52, %v442_v53 }
 0x158   : > { %v410_v59 = vpop.permute.xlu1 %409  ;;  %v412_v61 = vpop.permute.xlu0 %411 }
 0x159   : > { %v450_v62 = vadd.f32 %v449_v58, %v443_v57  ;;  %v444_v63 = vmul.f32 %v410_v59, %v1369_v4  ;;  %468 = vrot.lane.b32.xlu1 %v410_v59, %s1164_s24  ;;  %v445_v0 = vmul.f32 %v412_v61, %v1374_v9  ;;  %470 = vrot.lane.b32.xlu0 %v412_v61, %s1164_s24 }
 0x15b   : > { %v451_v2 = vadd.f32 %v450_v62, %v444_v63 }
 0x15c   : > { %v414_v3 = vpop.permute.xlu1 %413 }
 0x15d   : > { %v452_v5 = vadd.f32 %v451_v2, %v445_v0  ;;  %v446_v6 = vmul.f32 %v414_v3, %v1377_v12  ;;  %472 = vrot.lane.b32.xlu1 %v414_v3, %s1164_s24 }
 0x15f   : > { %v453_v8 = vadd.f32 %v452_v5, %v446_v6 }
 0x161   : > { %v455_v7 = vsel %vm454_vm1, %v453_v8, 0.0 }
 0x162   : > { %896 = vst [vmem:[%s1383_s8 + $0x10] sm:$0xff] %v455_v7 }
 0x1bf   : > { %v459_v10 = vpop.permute.xlu0 %458 }
 0x1c0   : > { %517 = vrot.lane.b32.xlu0 %v459_v10, %s1164_s24  ;;  %v498_v14 = vmul.f32 %v459_v10, %v1352_v54 }
 0x1c3   : > { %v461_v11 = vpop.permute.xlu1 %460  ;;  %v463_v13 = vpop.permute.xlu0 %462 }
 0x1c4   : > { %v499_v15 = vmul.f32 %v461_v11, %v1356_v56  ;;  %519 = vrot.lane.b32.xlu1 %v461_v11, %s1164_s24  ;;  %521 = vrot.lane.b32.xlu0 %v463_v13, %s1164_s24  ;;  %v500_v17 = vmul.f32 %v463_v13, %v1354_v55 }
 0x1c6   : > { %v506_v16 = vadd.f32 %v499_v15, %v498_v14 }
 0x1c7   : > { %v465_v18 = vpop.permute.xlu1 %464  ;;  %v467_v19 = vpop.permute.xlu0 %466 }
 0x1c8   : > { %v507_v20 = vadd.f32 %v506_v16, %v500_v17  ;;  %v501_v21 = vmul.f32 %v465_v18, %v1361_v60  ;;  %523 = vrot.lane.b32.xlu1 %v465_v18, %s1164_s24  ;;  %v502_v22 = vmul.f32 %v467_v19, %v1366_v1  ;;  %525 = vrot.lane.b32.xlu0 %v467_v19, %s1164_s24 }
 0x1ca   : > { %v508_v23 = vadd.f32 %v507_v20, %v501_v21 }
 0x1cb   : > { %v469_v24 = vpop.permute.xlu1 %468  ;;  %v471_v25 = vpop.permute.xlu0 %470 }
 0x1cc   : > { %v509_v26 = vadd.f32 %v508_v23, %v502_v22  ;;  %v503_v27 = vmul.f32 %v469_v24, %v1369_v4  ;;  %527 = vrot.lane.b32.xlu1 %v469_v24, %s1164_s24  ;;  %v504_v28 = vmul.f32 %v471_v25, %v1374_v9  ;;  %529 = vrot.lane.b32.xlu0 %v471_v25, %s1164_s24 }
 0x1ce   : > { %v510_v29 = vadd.f32 %v509_v26, %v503_v27 }
 0x1cf   : > { %v473_v30 = vpop.permute.xlu1 %472 }
 0x1d0   : > { %v511_v31 = vadd.f32 %v510_v29, %v504_v28  ;;  %v505_v32 = vmul.f32 %v473_v30, %v1377_v12  ;;  %531 = vrot.lane.b32.xlu1 %v473_v30, %s1164_s24 }
 0x1d2   : > { %v512_v33 = vadd.f32 %v511_v31, %v505_v32 }
 0x1d4   : > { %v514_v34 = vsel %vm513_vm2, %v512_v33, 0.0 }
 0x1d5   : > { %897 = vst [vmem:[%s1383_s8 + $0x18] sm:$0xff] %v514_v34 }
 0x232   : > { %v518_v35 = vpop.permute.xlu0 %517 }
 0x233   : > { %576 = vrot.lane.b32.xlu0 %v518_v35, %s1164_s24  ;;  %v557_v39 = vmul.f32 %v518_v35, %v1352_v54 }
 0x236   : > { %v520_v36 = vpop.permute.xlu1 %519  ;;  %v522_v38 = vpop.permute.xlu0 %521 }
 0x237   : > { %v558_v40 = vmul.f32 %v520_v36, %v1356_v56  ;;  %578 = vrot.lane.b32.xlu1 %v520_v36, %s1164_s24  ;;  %580 = vrot.lane.b32.xlu0 %v522_v38, %s1164_s24  ;;  %v559_v42 = vmul.f32 %v522_v38, %v1354_v55 }
 0x239   : > { %v565_v41 = vadd.f32 %v558_v40, %v557_v39 }
 0x23a   : > { %v524_v43 = vpop.permute.xlu1 %523  ;;  %v526_v44 = vpop.permute.xlu0 %525 }
 0x23b   : > { %v566_v45 = vadd.f32 %v565_v41, %v559_v42  ;;  %v560_v46 = vmul.f32 %v524_v43, %v1361_v60  ;;  %582 = vrot.lane.b32.xlu1 %v524_v43, %s1164_s24  ;;  %v561_v47 = vmul.f32 %v526_v44, %v1366_v1  ;;  %584 = vrot.lane.b32.xlu0 %v526_v44, %s1164_s24 }
 0x23d   : > { %v567_v48 = vadd.f32 %v566_v45, %v560_v46 }
 0x23e   : > { %v528_v49 = vpop.permute.xlu1 %527  ;;  %v530_v50 = vpop.permute.xlu0 %529 }
 0x23f   : > { %v568_v51 = vadd.f32 %v567_v48, %v561_v47  ;;  %v562_v52 = vmul.f32 %v528_v49, %v1369_v4  ;;  %586 = vrot.lane.b32.xlu1 %v528_v49, %s1164_s24  ;;  %v563_v53 = vmul.f32 %v530_v50, %v1374_v9  ;;  %588 = vrot.lane.b32.xlu0 %v530_v50, %s1164_s24 }
 0x241   : > { %v569_v57 = vadd.f32 %v568_v51, %v562_v52 }
 0x242   : > { %v532_v58 = vpop.permute.xlu1 %531 }
 0x243   : > { %v570_v59 = vadd.f32 %v569_v57, %v563_v53  ;;  %v564_v61 = vmul.f32 %v532_v58, %v1377_v12  ;;  %590 = vrot.lane.b32.xlu1 %v532_v58, %s1164_s24 }
 0x245   : > { %v571_v62 = vadd.f32 %v570_v59, %v564_v61 }
 0x247   : > { %v573_v63 = vsel %vm572_vm3, %v571_v62, 0.0 }
 0x248   : > { %898 = vst [vmem:[%s1383_s8 + $0x20] sm:$0xff] %v573_v63 }
 0x2a5   : > { %v577_v0 = vpop.permute.xlu0 %576 }
 0x2a6   : > { %635 = vrot.lane.b32.xlu0 %v577_v0, %s1164_s24  ;;  %v616_v5 = vmul.f32 %v577_v0, %v1352_v54 }
 0x2a9   : > { %v579_v2 = vpop.permute.xlu1 %578  ;;  %v581_v3 = vpop.permute.xlu0 %580 }
 0x2aa   : > { %v617_v6 = vmul.f32 %v579_v2, %v1356_v56  ;;  %637 = vrot.lane.b32.xlu1 %v579_v2, %s1164_s24  ;;  %639 = vrot.lane.b32.xlu0 %v581_v3, %s1164_s24  ;;  %v618_v7 = vmul.f32 %v581_v3, %v1354_v55 }
 0x2ac   : > { %v624_v8 = vadd.f32 %v617_v6, %v616_v5 }
 0x2ad   : > { %v583_v10 = vpop.permute.xlu1 %582  ;;  %v585_v11 = vpop.permute.xlu0 %584 }
 0x2ae   : > { %v625_v13 = vadd.f32 %v624_v8, %v618_v7  ;;  %v619_v14 = vmul.f32 %v583_v10, %v1361_v60  ;;  %641 = vrot.lane.b32.xlu1 %v583_v10, %s1164_s24  ;;  %v620_v15 = vmul.f32 %v585_v11, %v1366_v1  ;;  %643 = vrot.lane.b32.xlu0 %v585_v11, %s1164_s24 }
 0x2b0   : > { %v626_v16 = vadd.f32 %v625_v13, %v619_v14 }
 0x2b1   : > { %v587_v17 = vpop.permute.xlu1 %586  ;;  %v589_v18 = vpop.permute.xlu0 %588 }
 0x2b2   : > { %v627_v19 = vadd.f32 %v626_v16, %v620_v15  ;;  %v621_v20 = vmul.f32 %v587_v17, %v1369_v4  ;;  %645 = vrot.lane.b32.xlu1 %v587_v17, %s1164_s24  ;;  %v622_v21 = vmul.f32 %v589_v18, %v1374_v9  ;;  %647 = vrot.lane.b32.xlu0 %v589_v18, %s1164_s24 }
 0x2b4   : > { %v628_v22 = vadd.f32 %v627_v19, %v621_v20 }
 0x2b5   : > { %v591_v23 = vpop.permute.xlu1 %590 }
 0x2b6   : > { %v629_v24 = vadd.f32 %v628_v22, %v622_v21  ;;  %v623_v25 = vmul.f32 %v591_v23, %v1377_v12  ;;  %649 = vrot.lane.b32.xlu1 %v591_v23, %s1164_s24 }
 0x2b8   : > { %v630_v26 = vadd.f32 %v629_v24, %v623_v25 }
 0x2ba   : > { %v632_v27 = vsel %vm631_vm4, %v630_v26, 0.0 }
 0x2bb   : > { %899 = vst [vmem:[%s1383_s8 + $0x28] sm:$0xff] %v632_v27 }
 0x318   : > { %v636_v28 = vpop.permute.xlu0 %635 }
 0x319   : > { %694 = vrot.lane.b32.xlu0 %v636_v28, %s1164_s24  ;;  %v675_v31 = vmul.f32 %v636_v28, %v1352_v54 }
 0x31c   : > { %v638_v29 = vpop.permute.xlu1 %637  ;;  %v640_v30 = vpop.permute.xlu0 %639 }
 0x31d   : > { %v676_v32 = vmul.f32 %v638_v29, %v1356_v56  ;;  %696 = vrot.lane.b32.xlu1 %v638_v29, %s1164_s24  ;;  %698 = vrot.lane.b32.xlu0 %v640_v30, %s1164_s24  ;;  %v677_v34 = vmul.f32 %v640_v30, %v1354_v55 }
 0x31f   : > { %v683_v33 = vadd.f32 %v676_v32, %v675_v31 }
 0x320   : > { %v642_v35 = vpop.permute.xlu1 %641  ;;  %v644_v36 = vpop.permute.xlu0 %643 }
 0x321   : > { %v684_v38 = vadd.f32 %v683_v33, %v677_v34  ;;  %v678_v39 = vmul.f32 %v642_v35, %v1361_v60  ;;  %700 = vrot.lane.b32.xlu1 %v642_v35, %s1164_s24  ;;  %v679_v40 = vmul.f32 %v644_v36, %v1366_v1  ;;  %702 = vrot.lane.b32.xlu0 %v644_v36, %s1164_s24 }
 0x323   : > { %v685_v41 = vadd.f32 %v684_v38, %v678_v39 }
 0x324   : > { %v646_v42 = vpop.permute.xlu1 %645  ;;  %v648_v43 = vpop.permute.xlu0 %647 }
 0x325   : > { %v686_v44 = vadd.f32 %v685_v41, %v679_v40  ;;  %v680_v45 = vmul.f32 %v646_v42, %v1369_v4  ;;  %704 = vrot.lane.b32.xlu1 %v646_v42, %s1164_s24  ;;  %v681_v46 = vmul.f32 %v648_v43, %v1374_v9  ;;  %706 = vrot.lane.b32.xlu0 %v648_v43, %s1164_s24 }
 0x327   : > { %v687_v47 = vadd.f32 %v686_v44, %v680_v45 }
 0x328   : > { %v650_v48 = vpop.permute.xlu1 %649 }
 0x329   : > { %v688_v49 = vadd.f32 %v687_v47, %v681_v46  ;;  %v682_v50 = vmul.f32 %v650_v48, %v1377_v12  ;;  %708 = vrot.lane.b32.xlu1 %v650_v48, %s1164_s24 }
 0x32b   : > { %v689_v51 = vadd.f32 %v688_v49, %v682_v50 }
 0x32d   : > { %v691_v52 = vsel %vm690_vm5, %v689_v51, 0.0 }
 0x32e   : > { %900 = vst [vmem:[%s1383_s8 + $0x30] sm:$0xff] %v691_v52 }
 0x38b   : > { %v695_v53 = vpop.permute.xlu0 %694 }
 0x38c   : > { %v734_v59 = vmul.f32 %v695_v53, %v1352_v54 }
 0x38f   : > { %v697_v57 = vpop.permute.xlu1 %696  ;;  %v699_v58 = vpop.permute.xlu0 %698 }
 0x390   : > { %v735_v61 = vmul.f32 %v697_v57, %v1356_v56  ;;  %v736_v63 = vmul.f32 %v699_v58, %v1354_v55 }
 0x392   : > { %v742_v62 = vadd.f32 %v735_v61, %v734_v59 }
 0x393   : > { %v701_v0 = vpop.permute.xlu1 %700  ;;  %v703_v2 = vpop.permute.xlu0 %702 }
 0x394   : > { %v743_v3 = vadd.f32 %v742_v62, %v736_v63  ;;  %v737_v5 = vmul.f32 %v701_v0, %v1361_v60  ;;  %v738_v6 = vmul.f32 %v703_v2, %v1366_v1 }
 0x396   : > { %v744_v8 = vadd.f32 %v743_v3, %v737_v5 }
 0x397   : > { %v705_v7 = vpop.permute.xlu1 %704  ;;  %v707_v10 = vpop.permute.xlu0 %706 }
 0x398   : > { %v745_v54 = vadd.f32 %v744_v8, %v738_v6  ;;  %v739_v56 = vmul.f32 %v705_v7, %v1369_v4  ;;  %v740_v11 = vmul.f32 %v707_v10, %v1374_v9 }
 0x39a   : > { %v746_v55 = vadd.f32 %v745_v54, %v739_v56 }
 0x39b   : > { %v709_v13 = vpop.permute.xlu1 %708 }
 0x39c   : > { %v747_v60 = vadd.f32 %v746_v55, %v740_v11  ;;  %v741_v1 = vmul.f32 %v709_v13, %v1377_v12 }
 0x39e   : > { %v748_v14 = vadd.f32 %v747_v60, %v741_v1 }
 0x3a0   : > { %v750_v4 = vsel %vm749_vm6, %v748_v14, 0.0 }
 0x3a1   : > { %901 = vst [vmem:[%s1383_s8 + $0x38] sm:$0xff] %v750_v4 }
 0x3a2   : > { %1070 = shalt.err (!%p1067_p5)
}
 0x3a3   : > { %s1071_s21 = scalar_lea.hbm %s1513_s12, 1024  ;;  %s1075_s3 = scalar_lea.hbm %s1569_s2, 4096 }
 0x3a4   : > { %p1072_p6 = scmp.ne.s32.totalorder %s1513_s12, %s1071_s21  ;;  %p1076_p10 = scmp.lt.s32.totalorder %s1513_s12, %s1569_s2 }
 0x3a5   : > { %p1077_p11 = scmp.lt.s32.totalorder %s1075_s3, %s1071_s21 }
 0x3a6   : > { %p1073_p3 = pnand %p1072_p6, %p1249_p9 }
 0x3a7   : > { %p1078_p8 = por %p1077_p11, %p1076_p10 }
 0x3a8   : > { %p1074_p7 = pneg %p1073_p3 }
 0x3aa   : > { %p1079_p0 = pnand %p1078_p8, %p1074_p7 }
 0x3ac   : > { %1082 = shalt.err (!%p1079_p0)
}
 0x3ad   : > { %s1166_s24 = smov 128   ;;  %s1167_s8 = smov 256  }
 0x3ae   : > { %s1168_s26 = smov 8  }
 0x3af   : > { %911 = dma.vmem_to_hbm [thread:$0]  (%p1249_p9), %s1507_s17, 1024, %s1513_s12, %s754_s27, %s1166_s24, %s1167_s8, %s1168_s26  }
 0x3b0 PF: > { %p925_p1 = scmp.ge.s32.totalorder %s1157_s16, 2  ;;  %s783_s23 = sand.u32 1, %s1129_s9  }
 0x3b1   : > { %s784_s18 = scalar_lea.sflag [#allocation6], %s783_s23 }
 0x3b2   : > { %p921_p13 = pnand %p925_p1, %p1255_p12 }
 0x3b4   : > { %p922_p2 = pneg %p921_p13 }
 0x3b6   : > { %1124 = dma.done.wait (%p922_p2), %s784_s18, 1024  }
 0x3b7   : > { %1126 = vsyncadd (%p922_p2), %s784_s18, 4294966272  ;;  %s21_s16 = sadd.s32 1, %s1157_s16   ;;  %s1584_s13 = sld [smem:[#allocation13_spill]] }
 0x3b8   : > { %p18_p4 = scmp.ge.s32.totalorder %s21_s16, 6   ;;  %s1585_s25 = sld [smem:[#allocation14_spill]] }
 0x3b9   : > { %s1586_s15 = sld [smem:[#allocation15_spill]]  ;;  %s1587_s9 = smov %s1133_s10 }
 0x3ba   : > { %s1588_s10 = smov %s1137_s11  ;;  %s1589_s11 = smov %s1264_s30 }
 0x3bb   : > { %s1590_s12 = smov %s1149_s14  ;;  %20 = sbr.rel (!%p18_p4) target bundleno = 11 (0xb), region = 93 }
 0x3be   : > { %s1591_s14 = smov %s1585_s25 }
 0x3c0   :  { %789 = vsyncpa [#allocation5], 1 }
 0x3c1   :  { %791 = vsyncpa [#allocation5 + $0x1], 1 }
 0x3c2   :  { %792 = vsyncpa [#allocation8], 1 }
 0x3c3   :  { %794 = vsyncpa [#allocation8 + $0x1], 1 }
 0x3c4   :  { %795 = vsyncpa [#allocation6], 1 }
 0x3c5   :  { %797 = vsyncpa [#allocation6 + $0x1], 1 }

</bundles_post_ra>
